<compile_context>
chip_gen: v5e
topology: v5e:2x2
jax: 0.10.0
libtpu: 0.0.40
codegen_flags: <defaults>
</compile_context>

<pallas_src>
import functools

import jax
import jax.numpy as jnp
from jax.experimental import pallas as pl
from jax.experimental.pallas import tpu as pltpu


# ---------------------------------------------------------------------------
# Fused Pallas kernel: both encoders, one node tile, block-diagonal weights
# ---------------------------------------------------------------------------
def _bootcf_kernel(scalars_ref,              # SMEM (2,) f32: [now_time, 1/output]
                   mem_ref,                  # (TN, 4M) bf16 : [mem_o | mem_d]
                   last_ref,                 # (TN, 2)  f32  : [last_o, last_d]
                   static_ref,               # (TN, 2M) bf16 : [static_o | static_d]
                   w1_ref, b1_ref,           # (4M, 2M) bf16 blockdiag, (1, 2M) f32
                   w2_ref, b2_ref,           # (2M, 2M) bf16 blockdiag, (1, 2M) f32
                   lamb_ref, one_minus_ref,  # (1, 2M) f32 each
                   out_ref):                 # (TN, 2M) f32  : [emb_o | emb_d]
    now_time = scalars_ref[0]
    inv_output = scalars_ref[1]              # 1/output precomputed on host

    tn = out_ref.shape[0]
    two_m = out_ref.shape[1]
    m = two_m // 2

    # Fused embedding_transform for both encoders (MXU, f32 accumulation).
    h = jnp.dot(mem_ref[...], w1_ref[...],
                preferred_element_type=jnp.float32) + b1_ref[...]
    h = jnp.where(h > 0, h, 0.01 * h)                          # LeakyReLU(0.01)
    h = jnp.dot(h.astype(w2_ref.dtype), w2_ref[...],
                preferred_element_type=jnp.float32) + b2_ref[...]
    h = jnp.where(h > 0, h, 0.01 * h)                          # (TN, 2M) = [rec_o | rec_d]

    # recent_decayed = recent * exp((last_update - now_time) / output)
    # (per-node, per-encoder decay; lane-expanded to cover each encoder half)
    last = last_ref[...].astype(jnp.float32)                   # (TN, 2)
    decay = jnp.exp((last - now_time) * inv_output)            # (TN, 2), EUP exp
    decay_full = jnp.concatenate(
        [jnp.broadcast_to(decay[:, 0:1], (tn, m)),
         jnp.broadcast_to(decay[:, 1:2], (tn, m))], axis=-1)   # (TN, 2M)

    # e_lamb * static + (1 - e_lamb) * recent_decayed   (per-encoder e_lamb rows)
    out_ref[...] = (lamb_ref[...] * static_ref[...].astype(jnp.float32)
                    + one_minus_ref[...] * decay_full * h).astype(out_ref.dtype)


@functools.partial(jax.jit, static_argnames=("tn", "n_nodes"))
def _fused_forward(scalars, mem_cat, last_cat, static_cat,
                   w1_blk, b1_row, w2_blk, b2_row, lamb_row, one_minus_row,
                   *, tn, n_nodes):
    n_pad, four_m = mem_cat.shape
    two_m = four_m // 2
    assert n_pad % tn == 0, (n_pad, tn)

    def node(cols):       # node-tiled streams, auto double-buffered
        return pl.BlockSpec((tn, cols), lambda i: (i, 0))

    def whole(shape):     # weights / rows: resident (constant block index)
        return pl.BlockSpec(shape, lambda i: (0, 0))

    emb = pl.pallas_call(
        _bootcf_kernel,
        out_shape=jax.ShapeDtypeStruct((n_pad, two_m), jnp.float32),
        grid=(n_pad // tn,),
        in_specs=[
            pl.BlockSpec(memory_space=pltpu.MemorySpace.SMEM),   # scalars
            node(four_m),                                        # mem_cat
            node(last_cat.shape[1]),                             # last_cat (TN, 2)
            node(two_m),                                         # static_cat
            whole(w1_blk.shape), whole(b1_row.shape),
            whole(w2_blk.shape), whole(b2_row.shape),
            whole(lamb_row.shape), whole(one_minus_row.shape),
        ],
        out_specs=node(two_m),                                   # lane-dense (2M = 128)
        compiler_params=pltpu.CompilerParams(
            dimension_semantics=("parallel",),                   # 2-TC sharding on v7x
        ),
    )(scalars, mem_cat, last_cat, static_cat,
      w1_blk, b1_row, w2_blk, b2_row, lamb_row, one_minus_row)

    return emb[:n_nodes]


# ---------------------------------------------------------------------------
# Parameter / state construction (deterministic)
# ---------------------------------------------------------------------------
def make_encoder_params(key, n_nodes, memory_dimension, init_lamb):
    ks = jax.random.split(key, 7)
    m = memory_dimension
    bf16 = jnp.bfloat16
    return {
        # ExpMemory state: [numerator | denominator]-style 2M memory, last_update
        "memory": (0.1 * jax.random.normal(ks[0], (n_nodes, 2 * m), jnp.float32)).astype(bf16),
        "last_update": jax.random.uniform(ks[1], (n_nodes, 1), jnp.float32, 0.0, 10.0),
        # embedding_transform = Linear(2M, M) -> LeakyReLU -> Linear(M, M) -> LeakyReLU
        "w1": (0.05 * jax.random.normal(ks[2], (2 * m, m), jnp.float32)).astype(bf16),
        "b1": 0.05 * jax.random.normal(ks[3], (1, m), jnp.float32),
        "w2": (0.05 * jax.random.normal(ks[4], (m, m), jnp.float32)).astype(bf16),
        "b2": 0.05 * jax.random.normal(ks[5], (1, m), jnp.float32),
        # static_road_embedding.weight
        "static": (0.1 * jax.random.normal(ks[6], (n_nodes, m), jnp.float32)).astype(bf16),
        "e_lamb": jnp.float32(init_lamb),
    }


def _blockdiag(a, b):
    ka, na = a.shape
    kb, nb = b.shape
    top = jnp.concatenate([a, jnp.zeros((ka, nb), a.dtype)], axis=1)
    bot = jnp.concatenate([jnp.zeros((kb, na), b.dtype), b], axis=1)
    return jnp.concatenate([top, bot], axis=0)


def prepare_fused_state(params_o, params_d, tn=128):
    """Build the fused / padded / block-diagonal state ONCE (not per call).

    TODO(synk): when ExpMemoryUpdater is implemented, the updated memory /
    last_update must be written into this concatenated layout (or the kernel
    extended with an in-kernel memory update) instead of rebuilding it.
    """
    n_nodes, two_m = params_o["static"].shape[0], params_o["static"].shape[1] * 2
    m = two_m // 2

    # Round node count up to a multiple of 2*TN: grid is a multiple of 2 so
    # both v7x TensorCores get balanced work and >= 2 pipelined steps each.
    step = 2 * tn
    n_pad = max(step, ((n_nodes + step - 1) // step) * step)
    pad = n_pad - n_nodes

    def pad_rows(x):
        return jnp.pad(x, ((0, pad), (0, 0))) if pad else x

    mem_cat = pad_rows(jnp.concatenate([params_o["memory"], params_d["memory"]], axis=1))
    last_cat = pad_rows(jnp.concatenate([params_o["last_update"], params_d["last_update"]], axis=1))
    static_cat = pad_rows(jnp.concatenate([params_o["static"], params_d["static"]], axis=1))

    w1_blk = _blockdiag(params_o["w1"], params_d["w1"])          # (4M, 2M) bf16
    w2_blk = _blockdiag(params_o["w2"], params_d["w2"])          # (2M, 2M) bf16
    b1_row = jnp.concatenate([params_o["b1"], params_d["b1"]], axis=1)   # (1, 2M) f32
    b2_row = jnp.concatenate([params_o["b2"], params_d["b2"]], axis=1)   # (1, 2M) f32

    lamb_row = jnp.concatenate(
        [jnp.full((1, m), params_o["e_lamb"], jnp.float32),
         jnp.full((1, m), params_d["e_lamb"], jnp.float32)], axis=1)     # (1, 2M)
    one_minus_row = 1.0 - lamb_row

    return {
        "n_nodes": n_nodes, "tn": tn,
        "mem_cat": mem_cat, "last_cat": last_cat, "static_cat": static_cat,
        "w1_blk": w1_blk, "b1_row": b1_row, "w2_blk": w2_blk, "b2_row": b2_row,
        "lamb_row": lamb_row, "one_minus_row": one_minus_row,
    }


def bootcf_forward(state, source_nodes, destination_nodes, timestamps,
                   now_time, time_diffs, output):
    # TODO(synk): compute_message (np.unique + python-dict raw-message grouping,
    # ExpMessageAggregator, MLPMessageFunction, ExpMemoryUpdater) is undefined in
    # the provided source; updated_memory == stored memory here, as in the
    # len(source_nodes)==0 branch of the reference module.
    del source_nodes, destination_nodes, timestamps, time_diffs

    # exp((last - now)/output) is kept exactly as in the reference; callers are
    # expected to pass output > 0 and last_update <= now_time.
    scalars = jnp.array([now_time, 1.0 / output], dtype=jnp.float32)

    return _fused_forward(
        scalars,
        state["mem_cat"], state["last_cat"], state["static_cat"],
        state["w1_blk"], state["b1_row"], state["w2_blk"], state["b2_row"],
        state["lamb_row"], state["one_minus_row"],
        tn=state["tn"], n_nodes=state["n_nodes"])


# ---------------------------------------------------------------------------
# Pure-JAX reference (mirrors the kernel's numerics) for a correctness check
# ---------------------------------------------------------------------------
def _reference_forward(params_o, params_d, now_time, output):
    hi = jax.lax.Precision.HIGHEST

    def enc(p):
        mem = p["memory"].astype(jnp.float32)
        w1 = p["w1"].astype(jnp.float32)
        w2 = p["w2"].astype(jnp.float32)
        h = jnp.dot(mem, w1, precision=hi) + p["b1"]
        h = jnp.where(h > 0, h, 0.01 * h)
        h = jnp.dot(h.astype(jnp.bfloat16).astype(jnp.float32), w2, precision=hi) + p["b2"]
        h = jnp.where(h > 0, h, 0.01 * h)
        decay = jnp.exp((p["last_update"] - now_time) / output)
        recent = h * decay
        return p["e_lamb"] * p["static"].astype(jnp.float32) + (1.0 - p["e_lamb"]) * recent

    return jnp.concatenate([enc(params_o), enc(params_d)], axis=1)


# ---------------------------------------------------------------------------
if __name__ == "__main__":
    n_nodes = 268            # module default
    memory_dimension = 64    # module default -> 2M = 128 (lane-dense output)
    output = 30.0
    init_lamb = 0.5
    n_edges = 8

    key = jax.random.PRNGKey(0)
    k_o, k_d, k_e = jax.random.split(key, 3)

    params_o = make_encoder_params(k_o, n_nodes, memory_dimension, init_lamb)
    params_d = make_encoder_params(k_d, n_nodes, memory_dimension, init_lamb)
    state = prepare_fused_state(params_o, params_d, tn=128)

    ke1, ke2, ke3 = jax.random.split(k_e, 3)
    source_nodes = jax.random.randint(ke1, (n_edges,), 0, n_nodes)
    destination_nodes = jax.random.randint(ke2, (n_edges,), 0, n_nodes)
    timestamps = jax.random.uniform(ke3, (n_edges,), jnp.float32, 0.0, 10.0)
    now_time = 12.0
    time_diffs = now_time - timestamps

    emb = bootcf_forward(state, source_nodes, destination_nodes, timestamps,
                         now_time, time_diffs, output)
    emb = jax.block_until_ready(emb)

    assert emb.shape == (n_nodes, 2 * memory_dimension), emb.shape
    assert emb.dtype == jnp.float32
    assert bool(jnp.all(jnp.isfinite(emb)))

    ref = _reference_forward(params_o, params_d, now_time, output)
    max_err = float(jnp.max(jnp.abs(emb - ref)))
    assert bool(jnp.allclose(emb, ref, rtol=2e-3, atol=2e-3)), max_err

    print("KERNEL_OK")
</pallas_src>

<mosaic_0001>
module attributes {stable_mosaic.version = 11 : i64} {
  func.func @_bootcf_kernel(%arg0: i32, %arg1: memref<2xf32, #tpu.memory_space<smem>>, %arg2: memref<128x256xbf16, #tpu.memory_space<vmem>>, %arg3: memref<128x2xf32, #tpu.memory_space<vmem>>, %arg4: memref<128x128xbf16, #tpu.memory_space<vmem>>, %arg5: memref<256x128xbf16, #tpu.memory_space<vmem>>, %arg6: memref<1x128xf32, #tpu.memory_space<vmem>>, %arg7: memref<128x128xbf16, #tpu.memory_space<vmem>>, %arg8: memref<1x128xf32, #tpu.memory_space<vmem>>, %arg9: memref<1x128xf32, #tpu.memory_space<vmem>>, %arg10: memref<1x128xf32, #tpu.memory_space<vmem>>, %arg11: memref<128x128xf32, #tpu.memory_space<vmem>>) attributes {dimension_semantics = [#tpu.dimension_semantics<parallel>], iteration_bounds = array<i64: 4>, scalar_prefetch = 0 : i64, scratch_operands = 0 : i64, tpu.core_type = #tpu.core_type<tc>, window_params = [{transform_indices = @transform_0, window_bounds = array<i64: 2>}, {transform_indices = @transform_1, window_bounds = array<i64: 128, 256>}, {transform_indices = @transform_2, window_bounds = array<i64: 128, 2>}, {transform_indices = @transform_3, window_bounds = array<i64: 128, 128>}, {pipeline_mode = #tpu.pipeline_mode<synchronous>, transform_indices = @transform_4, window_bounds = array<i64: 256, 128>}, {pipeline_mode = #tpu.pipeline_mode<synchronous>, transform_indices = @transform_5, window_bounds = array<i64: 1, 128>}, {pipeline_mode = #tpu.pipeline_mode<synchronous>, transform_indices = @transform_6, window_bounds = array<i64: 128, 128>}, {pipeline_mode = #tpu.pipeline_mode<synchronous>, transform_indices = @transform_7, window_bounds = array<i64: 1, 128>}, {pipeline_mode = #tpu.pipeline_mode<synchronous>, transform_indices = @transform_8, window_bounds = array<i64: 1, 128>}, {pipeline_mode = #tpu.pipeline_mode<synchronous>, transform_indices = @transform_9, window_bounds = array<i64: 1, 128>}, {transform_indices = @transform_10, window_bounds = array<i64: 128, 128>}]} {
    %c0 = arith.constant 0 : index
    %0 = memref.load %arg1[%c0] : memref<2xf32, #tpu.memory_space<smem>>
    %c1 = arith.constant 1 : index
    %1 = memref.load %arg1[%c1] : memref<2xf32, #tpu.memory_space<smem>>
    %c0_0 = arith.constant 0 : index
    %c0_1 = arith.constant 0 : index
    %2 = vector.load %arg2[%c0_0, %c0_1] : memref<128x256xbf16, #tpu.memory_space<vmem>>, vector<128x256xbf16>
    %c0_2 = arith.constant 0 : index
    %c0_3 = arith.constant 0 : index
    %3 = vector.load %arg5[%c0_2, %c0_3] : memref<256x128xbf16, #tpu.memory_space<vmem>>, vector<256x128xbf16>
    %cst = arith.constant dense<0.000000e+00> : vector<128x128xf32>
    %4 = tpu.matmul %2, %3, %cst {dimension_numbers = #tpu.dot_dimension_numbers<[1], [0], [0], [1], [0, 0, 1, 1], [], []>} : vector<128x256xbf16>, vector<256x128xbf16>, vector<128x128xf32> -> vector<128x128xf32>
    %c0_4 = arith.constant 0 : index
    %c0_5 = arith.constant 0 : index
    %5 = vector.load %arg6[%c0_4, %c0_5] : memref<1x128xf32, #tpu.memory_space<vmem>>, vector<1x128xf32>
    %6 = vector.broadcast %5 : vector<1x128xf32> to vector<128x128xf32>
    %7 = arith.addf %4, %6 : vector<128x128xf32>
    %cst_6 = arith.constant 0.000000e+00 : f32
    %8 = vector.broadcast %cst_6 : f32 to vector<128x128xf32>
    %9 = arith.cmpf ogt, %7, %8 : vector<128x128xf32>
    %cst_7 = arith.constant 0.00999999977 : f32
    %10 = vector.broadcast %cst_7 : f32 to vector<128x128xf32>
    %11 = arith.mulf %10, %7 : vector<128x128xf32>
    %12 = arith.select %9, %7, %11 : vector<128x128xi1>, vector<128x128xf32>
    %13 = arith.truncf %12 : vector<128x128xf32> to vector<128x128xbf16>
    %c0_8 = arith.constant 0 : index
    %c0_9 = arith.constant 0 : index
    %14 = vector.load %arg7[%c0_8, %c0_9] : memref<128x128xbf16, #tpu.memory_space<vmem>>, vector<128x128xbf16>
    %cst_10 = arith.constant dense<0.000000e+00> : vector<128x128xf32>
    %15 = tpu.matmul %13, %14, %cst_10 {dimension_numbers = #tpu.dot_dimension_numbers<[1], [0], [0], [1], [0, 0, 1, 1], [], []>} : vector<128x128xbf16>, vector<128x128xbf16>, vector<128x128xf32> -> vector<128x128xf32>
    %c0_11 = arith.constant 0 : index
    %c0_12 = arith.constant 0 : index
    %16 = vector.load %arg8[%c0_11, %c0_12] : memref<1x128xf32, #tpu.memory_space<vmem>>, vector<1x128xf32>
    %17 = vector.broadcast %16 : vector<1x128xf32> to vector<128x128xf32>
    %18 = arith.addf %15, %17 : vector<128x128xf32>
    %cst_13 = arith.constant 0.000000e+00 : f32
    %19 = vector.broadcast %cst_13 : f32 to vector<128x128xf32>
    %20 = arith.cmpf ogt, %18, %19 : vector<128x128xf32>
    %cst_14 = arith.constant 0.00999999977 : f32
    %21 = vector.broadcast %cst_14 : f32 to vector<128x128xf32>
    %22 = arith.mulf %21, %18 : vector<128x128xf32>
    %23 = arith.select %20, %18, %22 : vector<128x128xi1>, vector<128x128xf32>
    %c0_15 = arith.constant 0 : index
    %c0_16 = arith.constant 0 : index
    %24 = vector.load %arg3[%c0_15, %c0_16] : memref<128x2xf32, #tpu.memory_space<vmem>>, vector<128x2xf32>
    %25 = vector.broadcast %0 : f32 to vector<128x2xf32>
    %26 = arith.subf %24, %25 : vector<128x2xf32>
    %27 = vector.broadcast %1 : f32 to vector<128x2xf32>
    %28 = arith.mulf %26, %27 : vector<128x2xf32>
    %29 = math.exp %28 : vector<128x2xf32>
    %30 = vector.extract_strided_slice %29 {offsets = [0, 0], sizes = [128, 1], strides = [1, 1]} : vector<128x2xf32> to vector<128x1xf32>
    %31 = vector.shape_cast %30 : vector<128x1xf32> to vector<128x1xf32>
    %32 = vector.broadcast %31 : vector<128x1xf32> to vector<128x64xf32>
    %33 = vector.extract_strided_slice %29 {offsets = [0, 1], sizes = [128, 1], strides = [1, 1]} : vector<128x2xf32> to vector<128x1xf32>
    %34 = vector.shape_cast %33 : vector<128x1xf32> to vector<128x1xf32>
    %35 = vector.broadcast %34 : vector<128x1xf32> to vector<128x64xf32>
    %36 = tpu.concatenate %32, %35 in 1 : vector<128x64xf32>, vector<128x64xf32> -> vector<128x128xf32>
    %c0_17 = arith.constant 0 : index
    %c0_18 = arith.constant 0 : index
    %37 = vector.load %arg9[%c0_17, %c0_18] : memref<1x128xf32, #tpu.memory_space<vmem>>, vector<1x128xf32>
    %c0_19 = arith.constant 0 : index
    %c0_20 = arith.constant 0 : index
    %38 = vector.load %arg4[%c0_19, %c0_20] : memref<128x128xbf16, #tpu.memory_space<vmem>>, vector<128x128xbf16>
    %39 = arith.extf %38 : vector<128x128xbf16> to vector<128x128xf32>
    %40 = vector.broadcast %37 : vector<1x128xf32> to vector<128x128xf32>
    %41 = arith.mulf %40, %39 : vector<128x128xf32>
    %c0_21 = arith.constant 0 : index
    %c0_22 = arith.constant 0 : index
    %42 = vector.load %arg10[%c0_21, %c0_22] : memref<1x128xf32, #tpu.memory_space<vmem>>, vector<1x128xf32>
    %43 = vector.broadcast %42 : vector<1x128xf32> to vector<128x128xf32>
    %44 = arith.mulf %43, %36 : vector<128x128xf32>
    %45 = arith.mulf %44, %23 : vector<128x128xf32>
    %46 = arith.addf %41, %45 : vector<128x128xf32>
    %c0_23 = arith.constant 0 : index
    %c0_24 = arith.constant 0 : index
    %47 = vector.load %arg11[%c0_23, %c0_24] : memref<128x128xf32, #tpu.memory_space<vmem>>, vector<128x128xf32>
    tpu.vector_store %arg11[%c0_23, %c0_24], %46 {strides = array<i32>} : memref<128x128xf32, #tpu.memory_space<vmem>>, vector<128x128xf32>,
    return
  }
  func.func @transform_0(%arg0: i32) -> i32 {
    %c0_i32 = arith.constant 0 : i32
    %c0_i32_0 = arith.constant 0 : i32
    return %c0_i32 : i32
  }
  func.func @transform_1(%arg0: i32) -> (i32, i32) {
    %c0_i32 = arith.constant 0 : i32
    %c0_i32_0 = arith.constant 0 : i32
    return %arg0, %c0_i32 : i32, i32
  }
  func.func @transform_2(%arg0: i32) -> (i32, i32) {
    %c0_i32 = arith.constant 0 : i32
    %c0_i32_0 = arith.constant 0 : i32
    return %arg0, %c0_i32 : i32, i32
  }
  func.func @transform_3(%arg0: i32) -> (i32, i32) {
    %c0_i32 = arith.constant 0 : i32
    %c0_i32_0 = arith.constant 0 : i32
    return %arg0, %c0_i32 : i32, i32
  }
  func.func @transform_4(%arg0: i32) -> (i32, i32) {
    %c0_i32 = arith.constant 0 : i32
    %c0_i32_0 = arith.constant 0 : i32
    %c0_i32_1 = arith.constant 0 : i32
    return %c0_i32, %c0_i32_0 : i32, i32
  }
  func.func @transform_5(%arg0: i32) -> (i32, i32) {
    %c0_i32 = arith.constant 0 : i32
    %c0_i32_0 = arith.constant 0 : i32
    %c0_i32_1 = arith.constant 0 : i32
    return %c0_i32, %c0_i32_0 : i32, i32
  }
  func.func @transform_6(%arg0: i32) -> (i32, i32) {
    %c0_i32 = arith.constant 0 : i32
    %c0_i32_0 = arith.constant 0 : i32
    %c0_i32_1 = arith.constant 0 : i32
    return %c0_i32, %c0_i32_0 : i32, i32
  }
  func.func @transform_7(%arg0: i32) -> (i32, i32) {
    %c0_i32 = arith.constant 0 : i32
    %c0_i32_0 = arith.constant 0 : i32
    %c0_i32_1 = arith.constant 0 : i32
    return %c0_i32, %c0_i32_0 : i32, i32
  }
  func.func @transform_8(%arg0: i32) -> (i32, i32) {
    %c0_i32 = arith.constant 0 : i32
    %c0_i32_0 = arith.constant 0 : i32
    %c0_i32_1 = arith.constant 0 : i32
    return %c0_i32, %c0_i32_0 : i32, i32
  }
  func.func @transform_9(%arg0: i32) -> (i32, i32) {
    %c0_i32 = arith.constant 0 : i32
    %c0_i32_0 = arith.constant 0 : i32
    %c0_i32_1 = arith.constant 0 : i32
    return %c0_i32, %c0_i32_0 : i32, i32
  }
  func.func @transform_10(%arg0: i32) -> (i32, i32) {
    %c0_i32 = arith.constant 0 : i32
    %c0_i32_0 = arith.constant 0 : i32
    return %arg0, %c0_i32 : i32, i32
  }
}

</mosaic_0001>

<bundles_post_ra>
// kernel: _fused_forward.1
= control target key start
LH: loop header
LB: loop body
LE: loop exit
PB: predicated region body
PF: predicated region fallthrough
CT: control target
= control target key end

     0   :  { %s2592_s0 = inlined_call_operand.vmem [shape: f32[2], index: 0, kind: input, shape index: {}]   ;;  %s2593_s1 = inlined_call_operand.vmem [shape: bf16[512,256], index: 1, kind: input, shape index: {}]   ;;  %s2594_s2 = inlined_call_operand.vmem [shape: f32[512,2], index: 2, kind: input, shape index: {}]   ;;  %s2595_s3 = inlined_call_operand.hbm [shape: bf16[512,128], index: 3, kind: input, shape index: {}]   ;;  %s2596_s4 = inlined_call_operand.hbm [shape: bf16[256,128], index: 4, kind: input, shape index: {}]   ;;  %s2597_s5 = inlined_call_operand.vmem [shape: f32[1,128], index: 5, kind: input, shape index: {}]   ;;  %s2598_s6 = inlined_call_operand.hbm [shape: bf16[128,128], index: 6, kind: input, shape index: {}]   ;;  %s2599_s7 = inlined_call_operand.vmem [shape: f32[1,128], index: 7, kind: input, shape index: {}]   ;;  %s2600_s8 = inlined_call_operand.vmem [shape: f32[1,128], index: 8, kind: input, shape index: {}]   ;;  %s2601_s9 = inlined_call_operand.vmem [shape: f32[1,128], index: 9, kind: input, shape index: {}]   ;;  %s2602_s10 = inlined_call_operand.vmem [shape: f32[512,128], index: 10, kind: output, shape index: {}]  }
   0x1   :  { %2606 = sst [smem:[#allocation12_spill]] %s2592_s0 }
   0x2   :  { %15 = vsyncpa [#allocation4], 0 }
   0x3   :  { %16 = vsyncpa [#allocation3], 0 }
   0x4   :  { %18 = vsyncpa [#allocation3 + $0x1], 0 }
   0x5   :  { %19 = vsyncpa [#allocation7], 0  ;;  %s2129_s13 = smov 0   ;;  %s2131_s14 = smov 0  }
   0x6   :  { %s2133_s15 = smov 0   ;;  %s2135_s16 = smov 0  }
   0x7 LB: > { %s2603_s17 = sadd.s32 4294967295, %s2065_s16   ;;  %p118_p0 = scmp.ne.s32.totalorder %s2057_s14, %s2053_s13  ;;  %s2065_s16 = sphi %s2135_s16, %s2618_s16   ;;  %s2061_s15 = sphi %s2133_s15, %s2617_s15   ;;  %s2057_s14 = sphi %s2131_s14, %s2616_s14   ;;  %s2053_s13 = sphi %s2129_s13, %s2615_s13  }
   0x8   : > { %p2151_p1 = scmp.eq.s32.totalorder %s2603_s17, 0  ;;  %p1514_p2 = scmp.ge.s32.totalorder %s2065_s16, 1 }
   0x9   : > { %p281_p3 = scmp.lt.s32.totalorder %s2065_s16, 5  ;;  %s302_s22 = sshll.u32 %s2596_s4, 4  ;;  %s303_s22 = int_to_ptr.hbm [resolvable:$true] %s302_s22 }
   0xa   : > { %p2159_p4 = por %p2151_p1, %p118_p0  ;;  %s2067_s24 = smov [#allocation6]  }
   0xb   : > { %p2166_p5 = pnand %p1514_p2, %p281_p3  ;;  %s304_s25 = sshll.u32 %s2067_s24, 4  ;;  %s305_s25 = int_to_ptr.vmem [resolvable:$true] %s304_s25 }
   0xc   : > { %s2610_s0 = sld [smem:[#allocation12_spill]]  ;;  %s2604_s29 = smov 64  }
   0xd   : > { %p1816_p6 = pneg %p2166_p5  ;;  %s2605_s30 = smov 4  }
   0xe   : > { %s2070_s11 = smov [#allocation2]   ;;  %s319_s20 = sshll.u32 %s2598_s6, 4  ;;  %s320_s20 = int_to_ptr.hbm [resolvable:$true] %s319_s20 }
   0xf   : > { %p1817_p7 = pnand %p1816_p6, %p2151_p1  ;;  %s2071_s21 = smov [#allocation8]  }
  0x10   : > { %s321_s24 = sshll.u32 %s2071_s21, 4  ;;  %s2187_s26 = sadd.s32 1, %s2065_s16   ;;  %s322_s24 = int_to_ptr.vmem [resolvable:$true] %s321_s24 }
  0x11   : > { %1822 = dma.hbm_to_vmem [thread:$0]  (!%p1817_p7), %s303_s22, 2048, %s305_s25, [#allocation7], %s2604_s29, %s2604_s29, %s2605_s30  }
  0x12   : > { %s293_s28 = sshll.u32 %s2610_s0, 4  ;;  %s102_s22 = ssub.s32 %s2065_s16, %s2187_s26  ;;  %s294_s28 = int_to_ptr.vmem [resolvable:$true] %s293_s28 }
  0x13   : > { %1819 = dma.vmem_to_smem (!%p1817_p7), %s294_s28, 16, %s2070_s11, [#allocation4]  }
  0x14   : > { %1825 = dma.hbm_to_vmem [thread:$0]  (!%p1817_p7), %s320_s20, 1024, %s322_s24, [#allocation7], %s2604_s29, %s2604_s29, %s2605_s30  }
  0x15   : > { %s105_s25 = sadd.s32 1, %s2061_s15  ;;  %p103_p8 = scmp.eq.s32.totalorder %s102_s22, 0 }
  0x16   : > { %p112_p9 = scmp.ne.s32.totalorder %s2061_s15, %s2057_s14  ;;  %p113_p10 = scmp.eq.s32.totalorder %s2065_s16, 0 }
  0x17   : > { %p1833_p11 = scmp.lt.s32.totalorder %s2065_s16, 4  ;;  %s363_s28 = sand.u32 1, %s2061_s15  }
  0x18   : > { %s2197_s27 = scalar_select %p103_p8, %s2061_s15, %s105_s25  }
  0x19   : > { %p114_p12 = por %p113_p10, %p112_p9  ;;  %s1519_s11 = sshll.u32 %s363_s28, 6 }
  0x1a   : > { %s1697_s12 = sshll.u32 %s2065_s16, 6  ;;  %s367_s20 = scalar_lea.vmem [#allocation5], %s1519_s11 }
  0x1b   : > { %s372_s17 = scalar_lea.hbm %s2595_s3, %s1697_s12  ;;  %s375_s24 = sshll.u32 %s367_s20, 4  ;;  %s376_s24 = int_to_ptr.vmem [resolvable:$true] %s375_s24 }
  0x1c   : > { %s373_s29 = sshll.u32 %s372_s17, 4  ;;  %p2204_p13 = pnand %p1833_p11, %p114_p12  ;;  %s374_s29 = int_to_ptr.hbm [resolvable:$true] %s373_s29 }
  0x1d   : > { %s364_s25 = scalar_lea.sflag [#allocation3], %s363_s28  ;;  %s1993_s30 = sshra.s32 %s374_s29, 4  ;;  %s1994_s30 = int_to_ptr.hbm [resolvable:$true] %s1993_s30 }
  0x1e   : > { %s1995_s0 = scalar_lea.hbm %s1994_s30, 64  ;;  %p1997_p2 = pneg %p2204_p13 }
  0x1f   : > { %p1996_p0 = scmp.ne.s32.totalorder %s1994_s30, %s1995_s0  ;;  %s2000_s17 = scalar_lea.hbm %s2595_s3, 256 }
  0x20   : > { %p2001_p7 = scmp.lt.s32.totalorder %s1994_s30, %s2595_s3  ;;  %p2002_p8 = scmp.lt.s32.totalorder %s2000_s17, %s1995_s0 }
  0x21   : > { %p1998_p3 = pnand %p1997_p2, %p1996_p0 }
  0x22   : > { %p2003_p9 = por %p2002_p8, %p2001_p7 }
  0x23   : > { %p1999_p6 = pneg %p1998_p3 }
  0x25   : > { %p2004_p10 = pnand %p2003_p9, %p1999_p6 }
  0x27   : > { %2007 = shalt.err (!%p2004_p10)
}
  0x28   : > { %s2612_s28 = smov 4   ;;  %s2613_s20 = smov 64  }
  0x29   : > { %1829 = dma.hbm_to_vmem [thread:$0]  (!%p2204_p13), %s374_s29, 1024, %s376_s24, %s364_s25, %s2613_s20, %s2613_s20, %s2612_s28  }
  0x2a   : > { %387 = sbr.rel (%p2166_p5) target bundleno = 461 (0x1cd), region = 60 }
  0x2f   : > { %2040 = dma.done.wait (%p2151_p1), [#allocation4], 16  }
  0x30   : > { %2042 = vsyncadd (%p2151_p1), [#allocation4], 4294967280  ;;  %s394_s0 = sand.u32 1, %s2057_s14  }
  0x31   : > { %s1524_s30 = sshll.u32 %s394_s0, 6  ;;  %s395_s12 = scalar_lea.sflag [#allocation3], %s394_s0 }
  0x32   : > { %s2228_s11 = scalar_lea.vmem [#allocation5], %s1524_s30 }
  0x33   : > { %2044 = dma.done.wait (%p2159_p4), %s395_s12, 1024  }
  0x34   : > { %2046 = vsyncadd (%p2159_p4), %s395_s12, 4294966272 }
  0x35   : > { %2048 = dma.done.wait (%p2151_p1), [#allocation7], 3072  }
  0x36   : > { %2050 = vsyncadd (%p2151_p1), [#allocation7], 4294964224 }
  0x37   : > { %414 = sfence }
  0x38   : > { %v1722_v0 = vld [vmem:[#allocation6 + $0x38] sm:$0xff]  ;;  %v1721_v2 = vld [vmem:[#allocation6 + $0x30] sm:$0xff]  ;;  %v1720_v4 = vld [vmem:[#allocation6 + $0x28] sm:$0xff]  ;;  %s2614_s19 = sadd.s32 4294967295, %s2065_s16   ;;  %s478_s22 = sld [smem:[#allocation2]]  ;;  %v2072_v61 = vmov 0  }
  0x39   : > { %v1730_v1 = vld [vmem:[#allocation6 + $0x78] sm:$0xff]  ;;  %708 = vmatpush.bf16.msra.mxu0 %v1722_v0  ;;  %1778 = vmatpush.bf16.msra.mxu3 %v1722_v0  ;;  %v1729_v3 = vld [vmem:[#allocation6 + $0x70] sm:$0xff]  ;;  %v1728_v5 = vld [vmem:[#allocation6 + $0x68] sm:$0xff]  ;;  %s1527_s23 = sshll.u32 %s2614_s19, 4  ;;  %s1534_s25 = sld [smem:[#allocation2 + $0x1]] }
  0x3a   : > { %757 = vmatpush.bf16.msra.mxu1 %v1730_v1  ;;  %v1719_v6 = vld [vmem:[#allocation6 + $0x20] sm:$0xff]  ;;  %p459_p1 = scmp.lt.s32.totalorder %s1527_s23, 63  ;;  %v1718_v8 = vld [vmem:[#allocation6 + $0x18] sm:$0xff]  ;;  %v1717_v10 = vld [vmem:[#allocation6 + $0x10] sm:$0xff]  ;;  %1877 = vset.pattern.permute.xlu1 %v2072_v61 }
  0x3b   : > { %v1727_v7 = vld [vmem:[#allocation6 + $0x60] sm:$0xff]  ;;  %v1726_v9 = vld [vmem:[#allocation6 + $0x58] sm:$0xff]  ;;  %v1725_v11 = vld [vmem:[#allocation6 + $0x50] sm:$0xff]  ;;  %1876 = vset.pattern.permute.xlu0 %v2072_v61  ;;  %1878 = vset.pattern.permute.xlu2 %v2072_v61 }
  0x3c   : > { %s2620_s23 = smov (!%p459_p1, %s1527_s23), 63  ;;  %v1716_v12 = vld [vmem:[#allocation6 + $0x8] sm:$0xff]  ;;  %v1715_v14 = vld [vmem:[#allocation6] sm:$0xff] }
  0x3d   : > { %709 = vmatpush.bf16.msra.mxu0 %v1721_v2  ;;  %1779 = vmatpush.bf16.msra.mxu3 %v1721_v2  ;;  %s2240_s18 = sshll.u32 %s2620_s23, 3  ;;  %v1724_v13 = vld [vmem:[#allocation6 + $0x48] sm:$0xff]  ;;  %v1723_v19 = vld [vmem:[#allocation6 + $0x40] sm:$0xff] }
  0x3e   : > { %758 = vmatpush.bf16.msra.mxu1 %v1729_v3  ;;  %s2246_s24 = scalar_lea.vmem %s2593_s1, %s2240_s18  ;;  %s2271_s21 = scalar_lea.vmem %s2594_s2, %s2240_s18  ;;  %v2279_v50 = vstv %s478_s22 }
  0x3f   : > { %v1537_v15 = vld [vmem:[%s2246_s24] sm:$0xf]  ;;  %v1700_v16 = vld [vmem:[%s2246_s24 + $0x4] sm:$0xf0]  ;;  %v1699_v20 = vld [vmem:[%s2246_s24 + $0x4] sm:$0xf]  ;;  %v2282_v55 = vstv %s1534_s25  ;;  %s2484_s22 = scalar_lea.vmem %s2602_s10, %s2240_s18 }
  0x40   : > { %v1585_v17 = vld [vmem:[%s2246_s24 + $0x60] sm:$0xf]  ;;  %v1712_v18 = vld [vmem:[%s2246_s24 + $0x64] sm:$0xf0]  ;;  %v1539_v21 = vld [vmem:[%s2246_s24 + $0x8] sm:$0xf0]  ;;  %v1538_v22 = vor.u32 %v1700_v16, %v1537_v15 }
  0x41   : > { %710 = vmatpush.bf16.msra.mxu0 %v1720_v4  ;;  %1780 = vmatpush.bf16.msra.mxu3 %v1720_v4  ;;  %v1586_v23 = vor.u32 %v1712_v18, %v1585_v17  ;;  %v1542_v24 = vor.u32 %v1699_v20, %v1539_v21  ;;  %v1545_v25 = vld [vmem:[%s2246_s24 + $0x10] sm:$0xf]  ;;  %v1702_v26 = vld [vmem:[%s2246_s24 + $0x14] sm:$0xf0]  ;;  %v1701_v29 = vld [vmem:[%s2246_s24 + $0x14] sm:$0xf] }
  0x42   : > { %759 = vmatpush.bf16.msra.mxu1 %v1728_v5  ;;  %v1593_v27 = vld [vmem:[%s2246_s24 + $0x70] sm:$0xf]  ;;  %v1714_v28 = vld [vmem:[%s2246_s24 + $0x74] sm:$0xf0]  ;;  %v1547_v30 = vld [vmem:[%s2246_s24 + $0x18] sm:$0xf0]  ;;  %v1546_v31 = vor.u32 %v1702_v26, %v1545_v25 }
  0x43   : > { %v1594_v32 = vor.u32 %v1714_v28, %v1593_v27  ;;  %v1550_v33 = vor.u32 %v1701_v29, %v1547_v30  ;;  %v1553_v34 = vld [vmem:[%s2246_s24 + $0x20] sm:$0xf]  ;;  %v1704_v35 = vld [vmem:[%s2246_s24 + $0x24] sm:$0xf0]  ;;  %v1711_v36 = vld [vmem:[%s2246_s24 + $0x64] sm:$0xf] }
  0x44   : > { %v1587_v37 = vld [vmem:[%s2246_s24 + $0x68] sm:$0xf0]  ;;  %v1703_v38 = vld [vmem:[%s2246_s24 + $0x24] sm:$0xf]  ;;  %v1554_v40 = vor.u32 %v1704_v35, %v1553_v34  ;;  %v1561_v43 = vld [vmem:[%s2246_s24 + $0x30] sm:$0xf] }
  0x45   : > { %711 = vmatpush.bf16.msra.mxu0 %v1719_v6  ;;  %1781 = vmatpush.bf16.msra.mxu3 %v1719_v6  ;;  %v1555_v39 = vld [vmem:[%s2246_s24 + $0x28] sm:$0xf0]  ;;  %v1590_v41 = vor.u32 %v1711_v36, %v1587_v37  ;;  %v1706_v44 = vld [vmem:[%s2246_s24 + $0x34] sm:$0xf0]  ;;  %v1713_v45 = vld [vmem:[%s2246_s24 + $0x74] sm:$0xf] }
  0x46   : > { %760 = vmatpush.bf16.msra.mxu1 %v1727_v7  ;;  %v1558_v42 = vor.u32 %v1703_v38, %v1555_v39  ;;  %v1595_v46 = vld [vmem:[%s2246_s24 + $0x78] sm:$0xf0]  ;;  %v1705_v47 = vld [vmem:[%s2246_s24 + $0x34] sm:$0xf]  ;;  %v1562_v51 = vor.u32 %v1706_v44, %v1561_v43  ;;  %v1027_v59 = vld [vmem:[%s2271_s21] sm:$0xff] }
  0x47   : > { %v1563_v48 = vld [vmem:[%s2246_s24 + $0x38] sm:$0xf0]  ;;  %v1029_v49 = vld [vmem:[%s2271_s21 + $0x10] sm:$0xff]  ;;  %v1598_v52 = vor.u32 %v1713_v45, %v1595_v46  ;;  %v1044_v63 = vsub.f32 %v1027_v59, %v2279_v50  ;;  %v1028_v0 = vld [vmem:[%s2271_s21 + $0x8] sm:$0xff] }
  0x48   : > { %v1046_v53 = vsub.f32 %v1029_v49, %v2279_v50  ;;  %v1566_v54 = vor.u32 %v1705_v47, %v1563_v48  ;;  %v1030_v58 = vld [vmem:[%s2271_s21 + $0x18] sm:$0xff]  ;;  %v1045_v2 = vsub.f32 %v1028_v0, %v2279_v50  ;;  %v1737_v6 = vld [vmem:[#allocation8 + $0x30] sm:$0xff]  ;;  %v1736_v16 = vld [vmem:[#allocation8 + $0x28] sm:$0xff] }
  0x49   : > { %712 = vmatpush.bf16.msra.mxu0 %v1718_v8  ;;  %1782 = vmatpush.bf16.msra.mxu3 %v1718_v8  ;;  %v1034_v60 = vld [vmem:[%s2271_s21 + $0x38] sm:$0xff]  ;;  %v1047_v62 = vsub.f32 %v1030_v58, %v2279_v50  ;;  %v1061_v4 = vmul.f32 %v2282_v55, %v1044_v63  ;;  %v1033_v15 = vld [vmem:[%s2271_s21 + $0x30] sm:$0xff]  ;;  %v1569_v17 = vld [vmem:[%s2246_s24 + $0x40] sm:$0xf] }
  0x4a   : > { %761 = vmatpush.bf16.msra.mxu1 %v1726_v9  ;;  %v1063_v56 = vmul.f32 %v2282_v55, %v1046_v53  ;;  %v1708_v18 = vld [vmem:[%s2246_s24 + $0x44] sm:$0xf0]  ;;  %v1707_v20 = vld [vmem:[%s2246_s24 + $0x44] sm:$0xf]  ;;  %v1571_v21 = vld [vmem:[%s2246_s24 + $0x48] sm:$0xf0] }
  0x4b   : > { %v1570_v25 = vor.u32 %v1708_v18, %v1569_v17  ;;  %v1574_v28 = vor.u32 %v1707_v20, %v1571_v21  ;;  %v1735_v30 = vld [vmem:[#allocation8 + $0x20] sm:$0xff]  ;;  %v1036_v34 = vld [vmem:[%s2271_s21 + $0x48] sm:$0xff]  ;;  %v1577_v45 = vld [vmem:[%s2246_s24 + $0x50] sm:$0xf] }
  0x4c   : > { %v1081_v57 = vmul.f32 1.442695, %v1063_v56  ;;  %v1040_v35 = vld [vmem:[%s2271_s21 + $0x68] sm:$0xff]  ;;  %v1053_v37 = vsub.f32 %v1036_v34, %v2279_v50  ;;  %v1710_v46 = vld [vmem:[%s2246_s24 + $0x54] sm:$0xf0]  ;;  %v1039_v58 = vld [vmem:[%s2271_s21 + $0x60] sm:$0xff] }
  0x4d   : > { %713 = vmatpush.bf16.msra.mxu0 %v1717_v10  ;;  %1783 = vmatpush.bf16.msra.mxu3 %v1717_v10  ;;  %v1077_v10 = vmul.f32 1.442695, %v1061_v4  ;;  %v1709_v47 = vld [vmem:[%s2246_s24 + $0x54] sm:$0xf]  ;;  %v1579_v48 = vld [vmem:[%s2246_s24 + $0x58] sm:$0xf0] }
  0x4e   : > { %762 = vmatpush.bf16.msra.mxu1 %v1725_v11  ;;  %1886 = vpow2.f32 %v1081_v57  ;;  %v1070_v43 = vmul.f32 %v2282_v55, %v1053_v37  ;;  %v1032_v57 = vld [vmem:[%s2271_s21 + $0x28] sm:$0xff]  ;;  %v1042_v4 = vld [vmem:[%s2271_s21 + $0x78] sm:$0xff] }
  0x4f   : > { %v1049_v59 = vsub.f32 %v1032_v57, %v2279_v50  ;;  %v1038_v17 = vld [vmem:[%s2271_s21 + $0x58] sm:$0xff]  ;;  %v1732_v20 = vld [vmem:[#allocation8 + $0x8] sm:$0xff] }
  0x50   : > { %v1095_v49 = vmul.f32 1.442695, %v1070_v43  ;;  %v1055_v18 = vsub.f32 %v1038_v17, %v2279_v50 }
  0x51   : > { %714 = vmatpush.bf16.msra.mxu0 %v1716_v12  ;;  %1784 = vmatpush.bf16.msra.mxu3 %v1716_v12  ;;  %v1066_v63 = vmul.f32 %v2282_v55, %v1049_v59 }
  0x52   : > { %763 = vmatpush.bf16.msra.mxu1 %v1724_v13 }
  0x55   : > { %715 = vmatpush.bf16.msra.mxu0 %v1715_v14  ;;  %1785 = vmatpush.bf16.msra.mxu3 %v1715_v14 }
  0x56   : > { %764 = vmatpush.bf16.msra.mxu1 %v1723_v19 }
  0x58   : > { %716 = vmatmul.bf16.vlgmr.msra.gmra.mxu0 %v1538_v22  ;;  %746 = vmatmul.bf16.vlgmr.msra.gmra.mxu3 %v1586_v23 }
  0x59   : > { %1786 = vmatpush.bf16.msrb.mxu3 %v1730_v1  ;;  %765 = vmatmul.bf16.vlgmr.msra.gmra.mxu1 %v1542_v24  ;;  %v1738_v1 = vld [vmem:[#allocation8 + $0x38] sm:$0xff]  ;;  %v1050_v24 = vsub.f32 %v1033_v15, %v2279_v50  ;;  %v2073_v15 = vmov 1  }
  0x5a   : > { %930 = vmatpush.bf16.msra.mxu2 %v1738_v1 }
  0x5d   : > { %1787 = vmatpush.bf16.msrb.mxu3 %v1729_v3  ;;  %v1064_v3 = vmul.f32 %v2282_v55, %v1047_v62 }
  0x5e   : > { %931 = vmatpush.bf16.msra.mxu2 %v1737_v6 }
  0x61   : > { %1788 = vmatpush.bf16.msrb.mxu3 %v1728_v5  ;;  %v1051_v5 = vsub.f32 %v1034_v60, %v2279_v50  ;;  %v1056_v60 = vsub.f32 %v1039_v58, %v2279_v50 }
  0x62   : > { %932 = vmatpush.bf16.msra.mxu2 %v1736_v16 }
  0x63   : > { %v1068_v14 = vmul.f32 %v2282_v55, %v1051_v5  ;;  %v1073_v0 = vmul.f32 %v2282_v55, %v1056_v60 }
  0x65   : > { %1789 = vmatpush.bf16.msrb.mxu3 %v1727_v7  ;;  %v1031_v7 = vld [vmem:[%s2271_s21 + $0x20] sm:$0xff]  ;;  %v1091_v26 = vmul.f32 1.442695, %v1068_v14 }
  0x66   : > { %v1048_v8 = vsub.f32 %v1031_v7, %v2279_v50  ;;  %933 = vmatpush.bf16.msra.mxu2 %v1735_v30 }
  0x68   : > { %721 = vmatmul.bf16.gmra.mxu0 %v1546_v31  ;;  %751 = vmatmul.bf16.gmra.mxu3 %v1594_v32  ;;  %v1065_v12 = vmul.f32 %v2282_v55, %v1048_v8  ;;  %v1067_v32 = vmul.f32 %v2282_v55, %v1050_v24  ;;  %v1731_v24 = vld [vmem:[#allocation8] sm:$0xff] }
  0x69   : > { %1790 = vmatpush.bf16.msrb.mxu3 %v1726_v9  ;;  %770 = vmatmul.bf16.gmra.mxu1 %v1550_v33  ;;  %v1083_v9 = vmul.f32 1.442695, %v1064_v3  ;;  %v1035_v3 = vld [vmem:[%s2271_s21 + $0x40] sm:$0xff] }
  0x6a   : > { %v1085_v22 = vmul.f32 1.442695, %v1065_v12  ;;  %v1089_v36 = vmul.f32 1.442695, %v1067_v32  ;;  %v1052_v5 = vsub.f32 %v1035_v3, %v2279_v50 }
  0x6b   : > { %1888 = vpow2.f32 %v1083_v9  ;;  %v1734_v9 = vld [vmem:[#allocation8 + $0x18] sm:$0xff] }
  0x6c   : > { %1890 = vpow2.f32 %v1077_v10  ;;  %v1069_v7 = vmul.f32 %v2282_v55, %v1052_v5  ;;  %934 = vmatpush.bf16.msra.mxu2 %v1734_v9 }
  0x6d   : > { %1791 = vmatpush.bf16.msrb.mxu3 %v1725_v11  ;;  %v1062_v11 = vmul.f32 %v2282_v55, %v1045_v2  ;;  %1892 = vpow2.f32 %v1085_v22  ;;  %v1101_v2 = vmul.f32 1.442695, %v1073_v0 }
  0x6f   : > { %v1079_v23 = vmul.f32 1.442695, %v1062_v11  ;;  %v1093_v11 = vmul.f32 1.442695, %v1069_v7 }
  0x71   : > { %1792 = vmatpush.bf16.msrb.mxu3 %v1724_v13  ;;  %v2299_v13 = vpop.eup %1886  ;;  %1894 = vpow2.f32 %v1079_v23 }
  0x72   : > { %1121 = vperm.xlu1 %1877, %v2299_v13   ;;  %v2311_v29 = vpop.eup %1888  ;;  %1896 = vpow2.f32 %v1091_v26 }
  0x73   : > { %v2313_v31 = vpop.eup %1890  ;;  %1898 = vpow2.f32 %v1089_v36 }
  0x74   : > { %1111 = vperm.xlu0 %1876, %v2313_v31   ;;  %v2322_v38 = vpop.eup %1892 }
  0x75   : > { %1793 = vmatpush.bf16.msrb.mxu3 %v1723_v19  ;;  %v1037_v19 = vld [vmem:[%s2271_s21 + $0x50] sm:$0xff]  ;;  %1131 = vperm.xlu2 %1878, %v2322_v38  }
  0x76   : > { %v1054_v27 = vsub.f32 %v1037_v19, %v2279_v50  ;;  %v1072_v19 = vmul.f32 %v2282_v55, %v1055_v18 }
  0x78   : > { %726 = vmatmul.bf16.gmra.mxu0 %v1554_v40  ;;  %795 = vmatmul.bf16.vlgmr.msrb.gmra.mxu3 %v1590_v41  ;;  %v1071_v33 = vmul.f32 %v2282_v55, %v1054_v27  ;;  %v1057_v40 = vsub.f32 %v1040_v35, %v2279_v50  ;;  %v2325_v41 = vpop.eup %1894  ;;  %v1099_v22 = vmul.f32 1.442695, %v1072_v19 }
  0x79   : > { %775 = vmatmul.bf16.gmra.mxu1 %v1558_v42  ;;  %1794 = vmatpush.bf16.msra.mxu3 %v1738_v1  ;;  %v2328_v42 = vpop.eup %1896  ;;  %v1087_v1 = vmul.f32 1.442695, %v1066_v63 }
  0x7a   : > { %1126 = vperm.xlu1 %1877, %v2311_v29   ;;  %v1097_v39 = vmul.f32 1.442695, %v1071_v33  ;;  %v1074_v44 = vmul.f32 %v2282_v55, %v1057_v40  ;;  %v2338_v53 = vpop.eup %1898 }
  0x7c   : > { %1116 = vperm.xlu0 %1876, %v2325_v41   ;;  %1900 = vpow2.f32 %v1097_v39 }
  0x7d   : > { %1795 = vmatpush.bf16.msra.mxu3 %v1737_v6  ;;  %1902 = vpow2.f32 %v1095_v49  ;;  %v1059_v6 = vsub.f32 %v1042_v4, %v2279_v50 }
  0x7f   : > { %v1076_v8 = vmul.f32 %v2282_v55, %v1059_v6 }
  0x81   : > { %1796 = vmatpush.bf16.msra.mxu3 %v1736_v16  ;;  %v1107_v12 = vmul.f32 1.442695, %v1076_v8  ;;  %v1733_v16 = vld [vmem:[#allocation8 + $0x10] sm:$0xff] }
  0x82   : > { %1146 = vperm.xlu1 %1877, %v2328_v42   ;;  %v2340_v56 = vpop.eup %1900  ;;  %935 = vmatpush.bf16.msra.mxu2 %v1733_v16 }
  0x83   : > { %v2348_v61 = vpop.eup %1902 }
  0x84   : > { %1141 = vperm.xlu0 %1876, %v2338_v53  }
  0x85   : > { %1797 = vmatpush.bf16.msra.mxu3 %v1735_v30 }
  0x86   : > { %936 = vmatpush.bf16.msra.mxu2 %v1732_v20 }
  0x88   : > { %731 = vmatmul.bf16.gmra.mxu0 %v1562_v51  ;;  %800 = vmatmul.bf16.gmra.mxu3 %v1598_v52  ;;  %v1578_v51 = vor.u32 %v1710_v46, %v1577_v45  ;;  %v1103_v52 = vmul.f32 1.442695, %v1074_v44 }
  0x89   : > { %780 = vmatmul.bf16.gmra.mxu1 %v1566_v54  ;;  %v1582_v54 = vor.u32 %v1709_v47, %v1579_v48  ;;  %1798 = vmatpush.bf16.msra.mxu3 %v1734_v9 }
  0x8a   : > { %1904 = vpow2.f32 %v1103_v52  ;;  %1161 = vperm.xlu1 %1877, %v2340_v56   ;;  %937 = vmatpush.bf16.msra.mxu2 %v1731_v24 }
  0x8b   : > { %1906 = vpow2.f32 %v1087_v1 }
  0x8c   : > { %1156 = vperm.xlu0 %1876, %v2348_v61   ;;  %1908 = vpow2.f32 %v1101_v2 }
  0x8d   : > { %1910 = vpow2.f32 %v1093_v11  ;;  %1799 = vmatpush.bf16.msra.mxu3 %v1733_v16 }
  0x8e   : > { %1912 = vpow2.f32 %v1107_v12 }
  0x8f   : > { %1914 = vpow2.f32 %v1099_v22 }
  0x90   : > { %v2350_v62 = vpop.eup %1904 }
  0x91   : > { %v1907_v10 = vpop.eup %1906  ;;  %1800 = vmatpush.bf16.msra.mxu3 %v1732_v20 }
  0x92   : > { %1176 = vperm.xlu1 %1877, %v2350_v62   ;;  %v2362_v14 = vpop.eup %1908  ;;  %1136 = vperm.xlu2 %1878, %v1907_v10  }
  0x93   : > { %v1911_v21 = vpop.eup %1910 }
  0x94   : > { %1171 = vperm.xlu0 %1876, %v2362_v14   ;;  %v2369_v23 = vpop.eup %1912 }
  0x95   : > { %1801 = vmatpush.bf16.msra.mxu3 %v1731_v24 }
  0x98   : > { %736 = vmatmul.bf16.gmra.mxu0 %v1570_v25  ;;  %v1041_v25 = vld [vmem:[%s2271_s21 + $0x70] sm:$0xff] }
  0x99   : > { %785 = vmatmul.bf16.gmra.mxu1 %v1574_v28  ;;  %v1058_v26 = vsub.f32 %v1041_v25, %v2279_v50  ;;  %v1915_v28 = vpop.eup %1914  ;;  %v2381_v50 = vld [vmem:[%s2597_s5] ss:$0 sm:$0xff] }
  0x9a   : > { %1879 = vset.pattern.permute.xlu1 %v2073_v15  ;;  %1151 = vperm.xlu2 %1878, %v1911_v21  }
  0x9b   : > { %1190 = vperm.xlu1 %1879, %v2313_v31   ;;  %v1075_v27 = vmul.f32 %v2282_v55, %v1058_v26 }
  0x9c   : > { %1186 = vperm.xlu0 %1876, %v2369_v23  }
  0x9d   : > { %v1105_v30 = vmul.f32 1.442695, %v1075_v27 }
  0x9f   : > { %1916 = vpow2.f32 %v1105_v30 }
  0xa2   : > { %1166 = vperm.xlu2 %1878, %v1915_v28  }
  0xa3   : > { %1202 = vperm.xlu1 %1879, %v2311_v29  }
  0xa4   : > { %1881 = vset.pattern.permute.xlu0 %v2073_v15 }
  0xa5   : > { %1198 = vperm.xlu0 %1881, %v2299_v13   ;;  %v1917_v31 = vpop.eup %1916 }
  0xa8   : > { %741 = vmatmul.bf16.gmra.mxu0 %v1578_v51 }
  0xa9   : > { %790 = vmatmul.bf16.gmra.mxu1 %v1582_v54 }
  0xaa   : > { %1181 = vperm.xlu2 %1878, %v1917_v31  }
  0xab   : > { %1210 = vperm.xlu1 %1879, %v1907_v10  }
  0xad   : > { %1218 = vperm.xlu0 %1881, %v2328_v42  }
  0xb2   : > { %1880 = vset.pattern.permute.xlu2 %v2073_v15 }
  0xb3   : > { %1222 = vperm.xlu1 %1879, %v1911_v21   ;;  %1194 = vperm.xlu2 %1880, %v2325_v41  }
  0xb5   : > { %1230 = vperm.xlu0 %1881, %v2340_v56  }
  0xbb   : > { %1234 = vperm.xlu1 %1879, %v1915_v28   ;;  %1206 = vperm.xlu2 %1880, %v2322_v38  }
  0xbd   : > { %1242 = vperm.xlu0 %1881, %v2350_v62  }
  0xc3   : > { %1246 = vperm.xlu1 %1879, %v1917_v31   ;;  %1214 = vperm.xlu2 %1880, %v2338_v53  }
  0xcb   : > { %1226 = vperm.xlu2 %1880, %v2348_v61  }
  0xd3   : > { %1238 = vperm.xlu2 %1880, %v2362_v14  }
  0xd5   : > { %v717_v55 = vpop.f32.mrf.mxu0 }
  0xd6   : > { %v766_v29 = vpop.f32.mrf.mxu1  ;;  %v718_v32 = vadd.f32 %v2381_v50, %v717_v55 }
  0xd8   : > { %v767_v13 = vadd.f32 %v766_v29, %v718_v32 }
  0xda   : > { %v822_v37 = vmul.f32 0.01, %v767_v13  ;;  %vm806_vm0 = vcmp.gt.f32.partialorder %v767_v13, 0.0 }
  0xdb   : > { %v747_v33 = vpop.f32.mrf.mxu3  ;;  %1250 = vperm.xlu2 %1880, %v2369_v23   ;;  %v2402_v23 = vpop.permute.xlu2 %1131 }
  0xdc   : > { %v838_v41 = vsel %vm806_vm0, %v767_v13, %v822_v37  ;;  %v748_v4 = vadd.f32 %v2381_v50, %v747_v33  ;;  %vm1253_vm0 = vcmask 523264  }
  0xdd   : > { %v719_v34 = vpop.f32.mrf.mxu0 }
  0xde   : > { %v720_v35 = vadd.f32 %v2381_v50, %v719_v34  ;;  %v768_v36 = vpop.f32.mrf.mxu1 }
  0xe0   : > { %v769_v39 = vadd.f32 %v768_v36, %v720_v35 }
  0xe2   : > { %v823_v40 = vmul.f32 0.01, %v769_v39  ;;  %vm807_vm1 = vcmp.gt.f32.partialorder %v769_v39, 0.0 }
  0xe3   : > { %v749_v42 = vpop.f32.mrf.mxu3 }
  0xe4   : > { %v839_v43 = vsel %vm807_vm1, %v769_v39, %v823_v40  ;;  %v750_v9 = vadd.f32 %v2381_v50, %v749_v42  ;;  %v2399_v12 = vpop.permute.xlu1 %1121 }
  0xe5   : > { %v722_v44 = vpop.f32.mrf.mxu0  ;;  %v854_v45 = vpack.c.bf16 %v839_v43, %v838_v41 }
  0xe6   : > { %v771_v46 = vpop.f32.mrf.mxu1  ;;  %v723_v47 = vadd.f32 %v2381_v50, %v722_v44  ;;  %v2404_v27 = vpop.permute.xlu0 %1111 }
  0xe7   : > { %938 = vmatmul.bf16.vlgmr.msra.gmra.mxu2 %v854_v45 }
  0xe8   : > { %v772_v49 = vadd.f32 %v771_v46, %v723_v47 }
  0xea   : > { %v824_v54 = vmul.f32 0.01, %v772_v49  ;;  %vm808_vm2 = vcmp.gt.f32.partialorder %v772_v49, 0.0 }
  0xeb   : > { %v752_v48 = vpop.f32.mrf.mxu3 }
  0xec   : > { %v840_v59 = vsel %vm808_vm2, %v772_v49, %v824_v54  ;;  %v2406_v30 = vpop.permute.xlu1 %1126  ;;  %v753_v29 = vadd.f32 %v2381_v50, %v752_v48  ;;  %v2413_v42 = vpop.permute.xlu2 %1136 }
  0xed   : > { %v724_v51 = vpop.f32.mrf.mxu0 }
  0xee   : > { %v725_v52 = vadd.f32 %v2381_v50, %v724_v51  ;;  %v773_v38 = vpop.f32.mrf.mxu1  ;;  %v2411_v39 = vpop.permute.xlu0 %1116 }
  0xf0   : > { %v774_v56 = vadd.f32 %v773_v38, %v725_v52 }
  0xf2   : > { %v825_v57 = vmul.f32 0.01, %v774_v56  ;;  %vm809_vm3 = vcmp.gt.f32.partialorder %v774_v56, 0.0 }
  0xf3   : > { %v754_v58 = vpop.f32.mrf.mxu3 }
  0xf4   : > { %v841_v60 = vsel %vm809_vm3, %v774_v56, %v825_v57  ;;  %v755_v36 = vadd.f32 %v2381_v50, %v754_v58  ;;  %v2415_v46 = vpop.permute.xlu1 %1146  ;;  %v1152_v58 = vpop.permute.xlu2 %1151 }
  0xf5   : > { %v727_v62 = vpop.f32.mrf.mxu0  ;;  %v855_v63 = vpack.c.bf16 %v841_v60, %v840_v59 }
  0xf6   : > { %v776_v0 = vpop.f32.mrf.mxu1  ;;  %v728_v53 = vadd.f32 %v2381_v50, %v727_v62  ;;  %v2418_v57 = vpop.permute.xlu0 %1141 }
  0xf7   : > { %943 = vmatmul.bf16.gmra.mxu2 %v855_v63 }
  0xf8   : > { %v777_v2 = vadd.f32 %v776_v0, %v728_v53 }
  0xfa   : > { %v826_v61 = vmul.f32 0.01, %v777_v2  ;;  %vm810_vm4 = vcmp.gt.f32.partialorder %v777_v2, 0.0 }
  0xfb   : > { %v796_v1 = vpop.f32.mrf.mxu3 }
  0xfc   : > { %v797_v7 = vadd.f32 %v796_v1, %v748_v4  ;;  %v842_v16 = vsel %vm810_vm4, %v777_v2, %v826_v61  ;;  %v1162_v60 = vpop.permute.xlu1 %1161  ;;  %v1167_v4 = vpop.permute.xlu2 %1166 }
  0xfd   : > { %v729_v3 = vpop.f32.mrf.mxu0 }
  0xfe   : > { %v730_v5 = vadd.f32 %v2381_v50, %v729_v3  ;;  %v778_v6 = vpop.f32.mrf.mxu1  ;;  %v834_v14 = vmul.f32 0.01, %v797_v7  ;;  %vm818_vm6 = vcmp.gt.f32.partialorder %v797_v7, 0.0  ;;  %v1157_v3 = vpop.permute.xlu0 %1156 }
 0x100   : > { %v779_v8 = vadd.f32 %v778_v6, %v730_v5  ;;  %v850_v22 = vsel %vm818_vm6, %v797_v7, %v834_v14 }
 0x102   : > { %v827_v10 = vmul.f32 0.01, %v779_v8  ;;  %vm811_vm5 = vcmp.gt.f32.partialorder %v779_v8, 0.0 }
 0x103   : > { %v798_v11 = vpop.f32.mrf.mxu3 }
 0x104   : > { %v799_v15 = vadd.f32 %v798_v11, %v750_v9  ;;  %v843_v17 = vsel %vm811_vm5, %v779_v8, %v827_v10  ;;  %v2421_v61 = vpop.permute.xlu1 %1176  ;;  %v2424_v11 = vpop.permute.xlu2 %1181 }
 0x105   : > { %v732_v18 = vpop.f32.mrf.mxu0  ;;  %v856_v19 = vpack.c.bf16 %v843_v17, %v842_v16 }
 0x106   : > { %vm819_vm7 = vcmp.gt.f32.partialorder %v799_v15, 0.0  ;;  %v835_v20 = vmul.f32 0.01, %v799_v15  ;;  %v781_v21 = vpop.f32.mrf.mxu1  ;;  %v733_v25 = vadd.f32 %v2381_v50, %v732_v18 }
 0x107   : > { %948 = vmatmul.bf16.gmra.mxu2 %v856_v19 }
 0x108   : > { %v851_v24 = vsel %vm819_vm7, %v799_v15, %v835_v20  ;;  %v782_v31 = vadd.f32 %v781_v21, %v733_v25  ;;  %v2426_v15 = vpop.permute.xlu0 %1171 }
 0x109   : > { %v860_v26 = vpack.c.bf16 %v851_v24, %v850_v22 }
 0x10a   : > { %v828_v13 = vmul.f32 0.01, %v782_v31  ;;  %vm812_vm8 = vcmp.gt.f32.partialorder %v782_v31, 0.0 }
 0x10b   : > { %v801_v28 = vpop.f32.mrf.mxu3  ;;  %968 = vmatmul.bf16.vlgmr.msra.gmra.mxu3 %v860_v26 }
 0x10c   : > { %v802_v34 = vadd.f32 %v801_v28, %v753_v29  ;;  %v844_v44 = vsel %vm812_vm8, %v782_v31, %v828_v13 }
 0x10d   : > { %v734_v55 = vpop.f32.mrf.mxu0  ;;  %v1191_v17 = vpop.permute.xlu1 %1190 }
 0x10e   : > { %v735_v32 = vadd.f32 %v2381_v50, %v734_v55  ;;  %v783_v33 = vpop.f32.mrf.mxu1  ;;  %v836_v41 = vmul.f32 0.01, %v802_v34  ;;  %vm820_vm10 = vcmp.gt.f32.partialorder %v802_v34, 0.0  ;;  %v1195_v26 = vpop.permute.xlu2 %1194 }
 0x110   : > { %v784_v35 = vadd.f32 %v783_v33, %v735_v32  ;;  %v852_v38 = vsel %vm820_vm10, %v802_v34, %v836_v41  ;;  %v2431_v55 = vpop.permute.xlu0 %1186  ;;  %v2440_v33 = vld [vmem:[%s2601_s9] ss:$0 sm:$0xff] }
 0x112   : > { %v829_v37 = vmul.f32 0.01, %v784_v35  ;;  %vm813_vm9 = vcmp.gt.f32.partialorder %v784_v35, 0.0 }
 0x113   : > { %v803_v40 = vpop.f32.mrf.mxu3 }
 0x114   : > { %v804_v43 = vadd.f32 %v803_v40, %v755_v36  ;;  %v845_v45 = vsel %vm813_vm9, %v784_v35, %v829_v37 }
 0x115   : > { %v737_v47 = vpop.f32.mrf.mxu0  ;;  %v857_v48 = vpack.c.bf16 %v845_v45, %v844_v44  ;;  %v2429_v31 = vpop.permute.xlu1 %1202 }
 0x116   : > { %v837_v49 = vmul.f32 0.01, %v804_v43  ;;  %v786_v51 = vpop.f32.mrf.mxu1  ;;  %vm821_vm11 = vcmp.gt.f32.partialorder %v804_v43, 0.0  ;;  %v738_v52 = vadd.f32 %v2381_v50, %v737_v47  ;;  %v2435_v32 = vpop.permute.xlu2 %1206 }
 0x117   : > { %953 = vmatmul.bf16.gmra.mxu2 %v857_v48 }
 0x118   : > { %v853_v54 = vsel %vm821_vm11, %v804_v43, %v837_v49  ;;  %v787_v59 = vadd.f32 %v786_v51, %v738_v52  ;;  %v2465_v52 = vld [vmem:[%s2599_s7] ss:$0 sm:$0xff] }
 0x119   : > { %v861_v56 = vpack.c.bf16 %v853_v54, %v852_v38  ;;  %v1740_v38 = vld [vmem:[%s2228_s11] sm:$0xff]   ;;  %v1254_v54 = vsel %vm1253_vm0, %v2404_v27, %v1191_v17  ;;  %v1255_v27 = vsel %vm1253_vm0, %v2411_v39, %v1195_v26 }
 0x11a   : > { %v830_v53 = vmul.f32 0.01, %v787_v59  ;;  %vm814_vm12 = vcmp.gt.f32.partialorder %v787_v59, 0.0 }
 0x11b   : > { %973 = vmatmul.bf16.gmra.mxu3 %v861_v56 }
 0x11c   : > { %v846_v5 = vsel %vm814_vm12, %v787_v59, %v830_v53  ;;  %v2473_v59 = vld [vmem:[%s2600_s8] ss:$0 sm:$0xff] }
 0x11d   : > { %v739_v62 = vpop.f32.mrf.mxu0  ;;  %v2433_v29 = vpop.permute.xlu1 %1210 }
 0x11e   : > { %v740_v63 = vadd.f32 %v2381_v50, %v739_v62  ;;  %v788_v0 = vpop.f32.mrf.mxu1  ;;  %v2446_v36 = vpop.permute.xlu2 %1214  ;;  %v1326_v62 = vmul.f32 %v2440_v33, %v1254_v54 }
 0x120   : > { %v789_v1 = vadd.f32 %v788_v0, %v740_v63 }
 0x122   : > { %v831_v2 = vmul.f32 0.01, %v789_v1  ;;  %vm815_vm13 = vcmp.gt.f32.partialorder %v789_v1, 0.0 }
 0x124   : > { %v847_v6 = vsel %vm815_vm13, %v789_v1, %v831_v2 }
 0x125   : > { %v742_v7 = vpop.f32.mrf.mxu0  ;;  %v858_v8 = vpack.c.bf16 %v847_v6, %v846_v5  ;;  %v1223_v13 = vpop.permute.xlu1 %1222  ;;  %v1327_v6 = vmul.f32 %v2440_v33, %v1255_v27 }
 0x126   : > { %v791_v9 = vpop.f32.mrf.mxu1  ;;  %v743_v10 = vadd.f32 %v2381_v50, %v742_v7  ;;  %v1262_v34 = vsel %vm1253_vm0, %v1152_v58, %v1223_v13  ;;  %v1227_v40 = vpop.permute.xlu2 %1226  ;;  %v1741_v58 = vunpack.c.l.bf16 %v1740_v38 }
 0x127   : > { %958 = vmatmul.bf16.gmra.mxu2 %v858_v8  ;;  %v2444_v35 = vmul.f32 %v2440_v33, %v1262_v34  ;;  %v1263_v44 = vsel %vm1253_vm0, %v1157_v3, %v1227_v40 }
 0x128   : > { %v792_v14 = vadd.f32 %v791_v9, %v743_v10  ;;  %v2454_v48 = vmul.f32 %v2440_v33, %v1263_v44  ;;  %v1306_v0 = vmul.f32 %v2473_v59, %v1741_v58  ;;  %v1771_v9 = vld [vmem:[%s2228_s11 + $0x8] sm:$0xff]   ;;  %v1772_v44 = vld [vmem:[%s2228_s11 + $0x10] sm:$0xff]  }
 0x129   : > { %v1745_v17 = vunpack.c.l.bf16 %v1771_v9  ;;  %v1746_v13 = vunpack.c.h.bf16 %v1771_v9  ;;  %v1749_v54 = vunpack.c.l.bf16 %v1772_v44 }
 0x12a   : > { %v832_v20 = vmul.f32 0.01, %v792_v14  ;;  %vm816_vm14 = vcmp.gt.f32.partialorder %v792_v14, 0.0 }
 0x12c   : > { %v848_v24 = vsel %vm816_vm14, %v792_v14, %v832_v20 }
 0x12d   : > { %v744_v16 = vpop.f32.mrf.mxu0  ;;  %v1235_v41 = vpop.permute.xlu1 %1234 }
 0x12e   : > { %v745_v18 = vadd.f32 %v2381_v50, %v744_v16  ;;  %v793_v19 = vpop.f32.mrf.mxu1  ;;  %v1199_v50 = vpop.permute.xlu0 %1198  ;;  %v1265_v45 = vsel %vm1253_vm0, %v1167_v4, %v1235_v41  ;;  %v1742_v4 = vunpack.c.h.bf16 %v1740_v38  ;;  %v1309_v41 = vmul.f32 %v2473_v59, %v1746_v13 }
 0x12f   : > { %v2457_v49 = vmul.f32 %v2440_v33, %v1265_v45 }
 0x130   : > { %v794_v21 = vadd.f32 %v793_v19, %v745_v18  ;;  %v1307_v8 = vmul.f32 %v2473_v59, %v1742_v4  ;;  %v1256_v18 = vsel %vm1253_vm0, %v2399_v12, %v1199_v50  ;;  %v1257_v12 = vsel %vm1253_vm0, %v2406_v30, %v2429_v31 }
 0x131   : > { %v1329_v40 = vmul.f32 %v2440_v33, %v1257_v12  ;;  %v1258_v30 = vsel %vm1253_vm0, %v2402_v23, %v2435_v32 }
 0x132   : > { %v833_v22 = vmul.f32 0.01, %v794_v21  ;;  %vm817_vm15 = vcmp.gt.f32.partialorder %v794_v21, 0.0 }
 0x134   : > { %v849_v25 = vsel %vm817_vm15, %v794_v21, %v833_v22  ;;  %v1328_v21 = vmul.f32 %v2440_v33, %v1256_v18  ;;  %v1308_v22 = vmul.f32 %v2473_v59, %v1745_v17 }
 0x135   : > { %v859_v28 = vpack.c.bf16 %v849_v25, %v848_v24 }
 0x136   : > { %v2448_v37 = vpop.permute.xlu0 %1218 }
 0x137   : > { %963 = vmatmul.bf16.gmra.mxu2 %v859_v28 }
 0x13e   : > { %v1231_v43 = vpop.permute.xlu0 %1230 }
 0x13f   : > { %v1264_v47 = vsel %vm1253_vm0, %v1162_v60, %v1231_v43 }
 0x140   : > { %v2460_v51 = vmul.f32 %v2440_v33, %v1264_v47 }
 0x146   : > { %v1243_v9 = vpop.permute.xlu0 %1242 }
 0x16a   : > { %v939_v56 = vpop.f32.mrf.mxu2 }
 0x16b   : > { %v940_v60 = vadd.f32 %v2465_v52, %v939_v56  ;;  %v1776_v56 = vld [vmem:[%s2228_s11 + $0x30] sm:$0xff]  }
 0x16d   : > { %vm979_vm1 = vcmp.gt.f32.partialorder %v940_v60, 0.0  ;;  %v995_v63 = vmul.f32 0.01, %v940_v60 }
 0x16f   : > { %v1011_v53 = vsel %vm979_vm1, %v940_v60, %v995_v63  ;;  %v1330_v60 = vmul.f32 %v2440_v33, %v1258_v30  ;;  %v1310_v63 = vmul.f32 %v2473_v59, %v1749_v54 }
 0x170   : > { %v1342_v1 = vmul.f32 %v1326_v62, %v1011_v53  ;;  %v1239_v62 = vpop.permute.xlu2 %1238  ;;  %v1765_v53 = vunpack.c.l.bf16 %v1776_v56 }
 0x172   : > { %v1358_v2 = vadd.f32 %v1342_v1, %v1306_v0  ;;  %v941_v3 = vpop.f32.mrf.mxu2  ;;  %v1266_v1 = vsel %vm1253_vm0, %v2426_v15, %v1239_v62 }
 0x173   : > { %v942_v5 = vadd.f32 %v2465_v52, %v941_v3  ;;  %v1338_v3 = vmul.f32 %v2440_v33, %v1266_v1 }
 0x174   : > { %1374 = vst [vmem:[%s2484_s22] sm:$0xff] %v1358_v2 }
 0x175   : > { %vm980_vm2 = vcmp.gt.f32.partialorder %v942_v5, 0.0  ;;  %v996_v7 = vmul.f32 0.01, %v942_v5 }
 0x177   : > { %v1012_v39 = vsel %vm980_vm2, %v942_v5, %v996_v7  ;;  %v1318_v5 = vmul.f32 %v2473_v59, %v1765_v53  ;;  %v1750_v7 = vunpack.c.h.bf16 %v1772_v44 }
 0x178   : > { %v1343_v10 = vmul.f32 %v1327_v6, %v1012_v39 }
 0x179   : > { %v1311_v18 = vmul.f32 %v2473_v59, %v1750_v7 }
 0x17a   : > { %v1359_v14 = vadd.f32 %v1343_v10, %v1307_v8  ;;  %v944_v16 = vpop.f32.mrf.mxu2  ;;  %v1259_v8 = vsel %vm1253_vm0, %v2413_v42, %v2433_v29  ;;  %v1267_v42 = vsel %vm1253_vm0, %v2421_v61, %v1243_v9  ;;  %v1260_v61 = vsel %vm1253_vm0, %v2418_v57, %v2446_v36 }
 0x17b   : > { %v945_v19 = vadd.f32 %v2465_v52, %v944_v16  ;;  %v1331_v16 = vmul.f32 %v2440_v33, %v1259_v8 }
 0x17c   : > { %1375 = vst [vmem:[%s2484_s22 + $0x8] sm:$0xff] %v1359_v14 }
 0x17d   : > { %vm981_vm3 = vcmp.gt.f32.partialorder %v945_v19, 0.0  ;;  %v997_v20 = vmul.f32 0.01, %v945_v19 }
 0x17f   : > { %v1013_v24 = vsel %vm981_vm3, %v945_v19, %v997_v20  ;;  %v1766_v20 = vunpack.c.h.bf16 %v1776_v56 }
 0x180   : > { %v1344_v25 = vmul.f32 %v1328_v21, %v1013_v24 }
 0x181   : > { %v1319_v13 = vmul.f32 %v2473_v59, %v1766_v20 }
 0x182   : > { %v1360_v26 = vadd.f32 %v1344_v25, %v1308_v22  ;;  %v946_v28 = vpop.f32.mrf.mxu2  ;;  %v1773_v22 = vld [vmem:[%s2228_s11 + $0x18] sm:$0xff]  }
 0x183   : > { %v947_v50 = vadd.f32 %v2465_v52, %v946_v28  ;;  %v1754_v1 = vunpack.c.h.bf16 %v1773_v22 }
 0x184   : > { %1376 = vst [vmem:[%s2484_s22 + $0x10] sm:$0xff] %v1360_v26  ;;  %v1339_v26 = vmul.f32 %v2440_v33, %v1267_v42 }
 0x185   : > { %vm982_vm4 = vcmp.gt.f32.partialorder %v947_v50, 0.0  ;;  %v998_v34 = vmul.f32 0.01, %v947_v50 }
 0x187   : > { %v1014_v43 = vsel %vm982_vm4, %v947_v50, %v998_v34  ;;  %v1753_v50 = vunpack.c.l.bf16 %v1773_v22 }
 0x188   : > { %v1345_v45 = vmul.f32 %v1329_v40, %v1014_v43  ;;  %v1247_v43 = vpop.permute.xlu1 %1246 }
 0x189   : > { %v1312_v54 = vmul.f32 %v2473_v59, %v1753_v50  ;;  %v1268_v57 = vsel %vm1253_vm0, %v2424_v11, %v1247_v43 }
 0x18a   : > { %v1361_v47 = vadd.f32 %v1345_v45, %v1309_v41  ;;  %v949_v38 = vpop.f32.mrf.mxu2  ;;  %v1777_v41 = vld [vmem:[%s2228_s11 + $0x38] sm:$0xff]   ;;  %v1340_v62 = vmul.f32 %v2440_v33, %v1268_v57 }
 0x18b   : > { %v950_v31 = vadd.f32 %v2465_v52, %v949_v38  ;;  %v1770_v8 = vunpack.c.h.bf16 %v1777_v41 }
 0x18c   : > { %1377 = vst [vmem:[%s2484_s22 + $0x18] sm:$0xff] %v1361_v47  ;;  %v1332_v47 = vmul.f32 %v2440_v33, %v1260_v61 }
 0x18d   : > { %vm983_vm5 = vcmp.gt.f32.partialorder %v950_v31, 0.0  ;;  %v999_v58 = vmul.f32 0.01, %v950_v31 }
 0x18e   : > { %v969_v0 = vpop.f32.mrf.mxu3 }
 0x18f   : > { %v1015_v27 = vsel %vm983_vm5, %v950_v31, %v999_v58  ;;  %v970_v23 = vadd.f32 %v2465_v52, %v969_v0  ;;  %v1769_v31 = vunpack.c.l.bf16 %v1777_v41 }
 0x190   : > { %v1346_v32 = vmul.f32 %v1330_v60, %v1015_v27  ;;  %v1261_v27 = vsel %vm1253_vm0, %v2415_v46, %v2448_v37 }
 0x191   : > { %vm991_vm6 = vcmp.gt.f32.partialorder %v970_v23, 0.0  ;;  %v1007_v2 = vmul.f32 0.01, %v970_v23  ;;  %v1320_v0 = vmul.f32 %v2473_v59, %v1769_v31 }
 0x192   : > { %v1362_v4 = vadd.f32 %v1346_v32, %v1310_v63  ;;  %v951_v6 = vpop.f32.mrf.mxu2  ;;  %v1251_v32 = vpop.permute.xlu2 %1250 }
 0x193   : > { %v1023_v39 = vsel %vm991_vm6, %v970_v23, %v1007_v2  ;;  %v952_v15 = vadd.f32 %v2465_v52, %v951_v6  ;;  %v1313_v6 = vmul.f32 %v2473_v59, %v1754_v1  ;;  %v1269_v46 = vsel %vm1253_vm0, %v2431_v55, %v1251_v32 }
 0x194   : > { %1378 = vst [vmem:[%s2484_s22 + $0x20] sm:$0xff] %v1362_v4  ;;  %v1354_v10 = vmul.f32 %v1338_v3, %v1023_v39  ;;  %v1333_v4 = vmul.f32 %v2440_v33, %v1261_v27 }
 0x195   : > { %vm984_vm7 = vcmp.gt.f32.partialorder %v952_v15, 0.0  ;;  %v1000_v14 = vmul.f32 0.01, %v952_v15 }
 0x196   : > { %v1370_v17 = vadd.f32 %v1354_v10, %v1318_v5  ;;  %v971_v19 = vpop.f32.mrf.mxu3 }
 0x197   : > { %v1016_v29 = vsel %vm984_vm7, %v952_v15, %v1000_v14  ;;  %v972_v21 = vadd.f32 %v2465_v52, %v971_v19  ;;  %v1774_v15 = vld [vmem:[%s2228_s11 + $0x20] sm:$0xff]   ;;  %v1341_v14 = vmul.f32 %v2440_v33, %v1269_v46 }
 0x198   : > { %1386 = vst [vmem:[%s2484_s22 + $0x60] sm:$0xff] %v1370_v17  ;;  %v1347_v24 = vmul.f32 %v1331_v16, %v1016_v29  ;;  %v1321_v17 = vmul.f32 %v2473_v59, %v1770_v8  ;;  %v1757_v19 = vunpack.c.l.bf16 %v1774_v15 }
 0x199   : > { %vm992_vm8 = vcmp.gt.f32.partialorder %v972_v21, 0.0  ;;  %v1008_v25 = vmul.f32 0.01, %v972_v21 }
 0x19a   : > { %v1363_v28 = vadd.f32 %v1347_v24, %v1311_v18  ;;  %v954_v12 = vpop.f32.mrf.mxu2  ;;  %v1314_v22 = vmul.f32 %v2473_v59, %v1757_v19 }
 0x19b   : > { %v1024_v34 = vsel %vm992_vm8, %v972_v21, %v1008_v25  ;;  %v955_v40 = vadd.f32 %v2465_v52, %v954_v12 }
 0x19c   : > { %1379 = vst [vmem:[%s2484_s22 + $0x28] sm:$0xff] %v1363_v28  ;;  %v1355_v44 = vmul.f32 %v1339_v26, %v1024_v34  ;;  %v1758_v28 = vunpack.c.h.bf16 %v1774_v15  ;;  %v1775_v34 = vld [vmem:[%s2228_s11 + $0x28] sm:$0xff]  }
 0x19d   : > { %vm985_vm9 = vcmp.gt.f32.partialorder %v955_v40, 0.0  ;;  %v1001_v45 = vmul.f32 0.01, %v955_v40  ;;  %v1762_v57 = vunpack.c.h.bf16 %v1775_v34 }
 0x19e   : > { %v1371_v38 = vadd.f32 %v1355_v44, %v1319_v13  ;;  %v974_v30 = vpop.f32.mrf.mxu3  ;;  %v1315_v50 = vmul.f32 %v2473_v59, %v1758_v28  ;;  %v1761_v44 = vunpack.c.l.bf16 %v1775_v34 }
 0x19f   : > { %v1017_v36 = vsel %vm985_vm9, %v955_v40, %v1001_v45  ;;  %v975_v56 = vadd.f32 %v2465_v52, %v974_v30 }
 0x1a0   : > { %1387 = vst [vmem:[%s2484_s22 + $0x68] sm:$0xff] %v1371_v38  ;;  %v1348_v58 = vmul.f32 %v1332_v47, %v1017_v36  ;;  %v1316_v47 = vmul.f32 %v2473_v59, %v1761_v44 }
 0x1a1   : > { %vm993_vm10 = vcmp.gt.f32.partialorder %v975_v56, 0.0  ;;  %v1009_v60 = vmul.f32 0.01, %v975_v56 }
 0x1a2   : > { %v1364_v63 = vadd.f32 %v1348_v58, %v1312_v54  ;;  %v956_v53 = vpop.f32.mrf.mxu2 }
 0x1a3   : > { %v1025_v11 = vsel %vm993_vm10, %v975_v56, %v1009_v60  ;;  %v957_v23 = vadd.f32 %v2465_v52, %v956_v53  ;;  %v1317_v56 = vmul.f32 %v2473_v59, %v1762_v57 }
 0x1a4   : > { %1380 = vst [vmem:[%s2484_s22 + $0x30] sm:$0xff] %v1364_v63  ;;  %v1356_v2 = vmul.f32 %v1340_v62, %v1025_v11 }
 0x1a5   : > { %vm986_vm11 = vcmp.gt.f32.partialorder %v957_v23, 0.0  ;;  %v1002_v3 = vmul.f32 0.01, %v957_v23 }
 0x1a6   : > { %v1372_v5 = vadd.f32 %v1356_v2, %v1320_v0  ;;  %v976_v7 = vpop.f32.mrf.mxu3 }
 0x1a7   : > { %v1018_v37 = vsel %vm986_vm11, %v957_v23, %v1002_v3  ;;  %v977_v39 = vadd.f32 %v2465_v52, %v976_v7 }
 0x1a8   : > { %1388 = vst [vmem:[%s2484_s22 + $0x70] sm:$0xff] %v1372_v5  ;;  %v1349_v9 = vmul.f32 %v1333_v4, %v1018_v37 }
 0x1a9   : > { %vm994_vm12 = vcmp.gt.f32.partialorder %v977_v39, 0.0  ;;  %v1010_v10 = vmul.f32 0.01, %v977_v39 }
 0x1aa   : > { %v1365_v16 = vadd.f32 %v1349_v9, %v1313_v6  ;;  %v959_v18 = vpop.f32.mrf.mxu2 }
 0x1ab   : > { %v1026_v20 = vsel %vm994_vm12, %v977_v39, %v1010_v10  ;;  %v960_v55 = vadd.f32 %v2465_v52, %v959_v18 }
 0x1ac   : > { %1381 = vst [vmem:[%s2484_s22 + $0x38] sm:$0xff] %v1365_v16  ;;  %v1357_v42 = vmul.f32 %v1341_v14, %v1026_v20 }
 0x1ad   : > { %vm987_vm13 = vcmp.gt.f32.partialorder %v960_v55, 0.0  ;;  %v1003_v29 = vmul.f32 0.01, %v960_v55 }
 0x1ae   : > { %v1373_v21 = vadd.f32 %v1357_v42, %v1321_v17 }
 0x1af   : > { %v1019_v24 = vsel %vm987_vm13, %v960_v55, %v1003_v29 }
 0x1b0   : > { %1389 = vst [vmem:[%s2484_s22 + $0x78] sm:$0xff] %v1373_v21  ;;  %v1350_v33 = vmul.f32 %v2444_v35, %v1019_v24 }
 0x1b2   : > { %v1366_v25 = vadd.f32 %v1350_v33, %v1314_v22  ;;  %v961_v26 = vpop.f32.mrf.mxu2 }
 0x1b3   : > { %v962_v13 = vadd.f32 %v2465_v52, %v961_v26 }
 0x1b4   : > { %1382 = vst [vmem:[%s2484_s22 + $0x40] sm:$0xff] %v1366_v25 }
 0x1b5   : > { %vm988_vm14 = vcmp.gt.f32.partialorder %v962_v13, 0.0  ;;  %v1004_v12 = vmul.f32 0.01, %v962_v13 }
 0x1b7   : > { %v1020_v61 = vsel %vm988_vm14, %v962_v13, %v1004_v12 }
 0x1b8   : > { %v1351_v40 = vmul.f32 %v2454_v48, %v1020_v61 }
 0x1ba   : > { %v1367_v41 = vadd.f32 %v1351_v40, %v1315_v50  ;;  %v964_v43 = vpop.f32.mrf.mxu2 }
 0x1bb   : > { %v965_v35 = vadd.f32 %v2465_v52, %v964_v43 }
 0x1bc   : > { %1383 = vst [vmem:[%s2484_s22 + $0x48] sm:$0xff] %v1367_v41 }
 0x1bd   : > { %vm989_vm15 = vcmp.gt.f32.partialorder %v965_v35, 0.0  ;;  %v1005_v45 = vmul.f32 0.01, %v965_v35 }
 0x1bf   : > { %v1021_v38 = vsel %vm989_vm15, %v965_v35, %v1005_v45 }
 0x1c0   : > { %v1352_v54 = vmul.f32 %v2460_v51, %v1021_v38 }
 0x1c2   : > { %v1368_v30 = vadd.f32 %v1352_v54, %v1316_v47  ;;  %v966_v31 = vpop.f32.mrf.mxu2 }
 0x1c3   : > { %v967_v36 = vadd.f32 %v2465_v52, %v966_v31 }
 0x1c4   : > { %1384 = vst [vmem:[%s2484_s22 + $0x50] sm:$0xff] %v1368_v30 }
 0x1c5   : > { %vm990_vm0 = vcmp.gt.f32.partialorder %v967_v36, 0.0  ;;  %v1006_v48 = vmul.f32 0.01, %v967_v36 }
 0x1c7   : > { %v1022_v58 = vsel %vm990_vm0, %v967_v36, %v1006_v48 }
 0x1c8   : > { %v1353_v60 = vmul.f32 %v2457_v49, %v1022_v58 }
 0x1ca   : > { %v1369_v62 = vadd.f32 %v1353_v60, %v1317_v56 }
 0x1cc   : > { %1385 = vst [vmem:[%s2484_s22 + $0x58] sm:$0xff] %v1369_v62 }
 0x1cd PF: > { %p22_p4 = scmp.ge.s32.totalorder %s2187_s26, 6   ;;  %s2615_s13 = smov %s2057_s14 }
 0x1ce   : > { %s2616_s14 = smov %s2061_s15  ;;  %s2617_s15 = smov %s2197_s27 }
 0x1cf   : > { %s2618_s16 = smov %s2187_s26  ;;  %24 = sbr.rel (!%p22_p4) target bundleno = 7 (0x7), region = 119 }
 0x1d4   :  { %1412 = vsyncpa [#allocation3], 1 }
 0x1d5   :  { %1414 = vsyncpa [#allocation3 + $0x1], 1 }
 0x1d6   :  { %1415 = vsyncpa [#allocation7], 1 }
 0x1d7   :  { %1416 = vsyncpa [#allocation4], 1 }
 0x1d8   :  { %1418 = vsyncpa [#allocation4 + $0x1], 1 }

</bundles_post_ra>
